<compile_context>
chip_gen: v7x
topology: tpu7x:2x2x1
jax: 0.10.0
libtpu: 0.0.40
codegen_flags: <defaults>
</compile_context>

<pallas_src>
import jax
import jax.numpy as jnp
from jax.experimental import pallas as pl
from jax.experimental.pallas import tpu as pltpu

CRITEO_INPUT_SIZE = 17
CRITEO_CATE_BIN_SIZE = (512, 128, 256, 256, 64, 256, 256, 16, 256)
CRITEO_NUM_BIN_SIZE = (64, 16, 128, 64, 128, 64, 512, 512)
EMBEDDING_NUM = (*CRITEO_CATE_BIN_SIZE, *CRITEO_NUM_BIN_SIZE)   # 17 tables
EMBEDDING_SIZE = 16
HIDDEN_SIZES = [256, 256, 128]
OUTPUT_SIZE = 1
OUTPUT_PAD = 8            # narrow output pad; legal because block last dim == array dim
LEAKY_SLOPE = 0.01        # nn.LeakyReLU default negative_slope


def _round_up(x, m):
    return (x + m - 1) // m * m


def _tpu_vmem_bytes():
    """Best-effort query of per-core VMEM capacity; None if unavailable."""
    try:
        info = pltpu.get_tpu_info()
    except Exception:
        return None
    for attr in ("vmem_capacity_bytes", "vmem_bytes", "vmem_capacity"):
        v = getattr(info, attr, None)
        if isinstance(v, int) and v > 0:
            return v
    return None


def _default_tiling():
    """Generation-aware (tile_b, vmem_limit_bytes)."""
    vmem = _tpu_vmem_bytes()
    if vmem is not None and vmem >= 100 * 1024 * 1024:
        # v5e / v6e: 128 MiB physical VMEM -> bigger batch tiles, higher scoped limit.
        return 4096, 96 * 1024 * 1024
    # v7x (64 MiB physical VMEM per TC) or unknown: conservative defaults.
    return 2048, 48 * 1024 * 1024


def _leaky_relu_bf16(x_f32):
    """LeakyReLU as max(x, 0.01*x): 2 VALU ops, executed packed in bf16.

    Bias add / accumulation stay f32 upstream; only the activation + cast for the
    next MXU pass run in bf16 (the 'safe middle ground' numerically).
    """
    x = x_f32.astype(jnp.bfloat16)
    return jnp.maximum(x, x * LEAKY_SLOPE)


def mlp_kernel(x_ref,
               w0_ref, b0_ref,
               w1_ref, b1_ref,
               w2_ref, b2_ref,
               w3_ref, b3_ref,
               o_ref):
    """Fused 4-layer MLP on one (tile_b, 272) bf16 activation tile.

    MXU operands are bf16; accumulation and bias add are f32; LeakyReLU is a
    max-based bf16 op. Final layer is padded to OUTPUT_PAD (=8) columns so the
    HBM writeback is only 32 B/sample while stores stay layout-legal.
    """
    h = x_ref[...]                                                        # bf16
    h = _leaky_relu_bf16(
        jnp.dot(h, w0_ref[...], preferred_element_type=jnp.float32) + b0_ref[...])
    h = _leaky_relu_bf16(
        jnp.dot(h, w1_ref[...], preferred_element_type=jnp.float32) + b1_ref[...])
    h = _leaky_relu_bf16(
        jnp.dot(h, w2_ref[...], preferred_element_type=jnp.float32) + b2_ref[...])
    out = jnp.dot(h, w3_ref[...], preferred_element_type=jnp.float32) + b3_ref[...]
    o_ref[...] = out.astype(o_ref.dtype)


def prepare_kernel_params(linears):
    """Cast weights to bf16 and pad the final layer to OUTPUT_PAD columns."""
    kparams = []
    last = len(linears) - 1
    for li, (w, b) in enumerate(linears):
        w = w.astype(jnp.bfloat16)
        b = b.astype(jnp.float32)
        if li == last:
            w = jnp.pad(w, ((0, 0), (0, OUTPUT_PAD - w.shape[1])))
            b = jnp.pad(b, ((0, 0), (0, OUTPUT_PAD - b.shape[1])))
        kparams.append((w, b))
    return kparams


def criteo_mlp_pallas(x_emb, kernel_params, *, tile_b=None, vmem_limit_bytes=None):
    """x_emb: (B, 272) bf16 concatenated embeddings; kernel_params: (W, b) pairs."""
    B, d_in = x_emb.shape

    d_tile, d_vmem = _default_tiling()
    if tile_b is None:
        tile_b = d_tile
    if vmem_limit_bytes is None:
        vmem_limit_bytes = d_vmem

    # Cap tile_b near ceil(B/2) (rounded to 8) so the grid has >= 2 steps whenever
    # possible: with ("parallel",) semantics both v7x TensorCores then get work.
    tile_b = max(8, min(tile_b, _round_up(pl.cdiv(B, 2), 8)))

    # Ragged batches: let Pallas handle the partial last block. Tail rows of the
    # last input block are uninitialized, but the MLP is strictly row-wise and the
    # out-of-bounds output rows are masked on writeback -- no jnp.pad HBM copy.
    grid = (pl.cdiv(B, tile_b),)

    flat_args = [x_emb]
    # Batch-tiled activation: block index advances with the grid -> pipelined DMA.
    in_specs = [pl.BlockSpec((tile_b, d_in), lambda i: (i, 0))]
    for w, b in kernel_params:
        flat_args += [w, b]
        # Grid-invariant weights/biases: constant block index keeps them resident
        # in VMEM (DMA'd once) while batch tiles stream through.
        in_specs += [pl.BlockSpec(w.shape, lambda i: (0, 0)),
                     pl.BlockSpec(b.shape, lambda i: (0, 0))]

    out = pl.pallas_call(
        mlp_kernel,
        out_shape=jax.ShapeDtypeStruct((B, OUTPUT_PAD), jnp.float32),
        grid_spec=pltpu.PrefetchScalarGridSpec(
            num_scalar_prefetch=0,
            grid=grid,
            in_specs=in_specs,
            out_specs=pl.BlockSpec((tile_b, OUTPUT_PAD), lambda i: (i, 0)),
        ),
        compiler_params=pltpu.CompilerParams(
            # Batch tiles are independent -> shard across TensorCores on v7x.
            dimension_semantics=("parallel",),
            vmem_limit_bytes=vmem_limit_bytes,
        ),
    )(*flat_args)
    return out[:, :OUTPUT_SIZE]


def init_params(key):
    """Deterministic parameter init matching the module's shapes."""
    net_input_size = len(EMBEDDING_NUM) * EMBEDDING_SIZE  # 272
    dims = [net_input_size] + HIDDEN_SIZES + [OUTPUT_SIZE]

    keys = jax.random.split(key, len(EMBEDDING_NUM) + 2 * (len(dims) - 1))
    k_idx = 0

    # Embedding tables: (num_embeddings, embedding_size)
    embeddings = []
    for n in EMBEDDING_NUM:
        embeddings.append(
            jax.random.normal(keys[k_idx], (n, EMBEDDING_SIZE), jnp.float32) * 0.05)
        k_idx += 1

    # Linear layers: stored as (in, out) so kernel does x @ W + b.
    linears = []
    for i in range(len(dims) - 1):
        fan_in, fan_out = dims[i], dims[i + 1]
        bound = 1.0 / jnp.sqrt(fan_in)
        w = jax.random.uniform(keys[k_idx], (fan_in, fan_out), jnp.float32,
                               minval=-bound, maxval=bound)
        k_idx += 1
        b = jax.random.uniform(keys[k_idx], (1, fan_out), jnp.float32,
                               minval=-bound, maxval=bound)
        k_idx += 1
        linears.append((w, b))

    return embeddings, linears


def criteo_mlp_forward(x, embeddings, linears, *, tile_b=None):
    """Full forward pass: bf16 embedding lookup (XLA glue) + fused Pallas MLP."""
    x = x.reshape(-1, CRITEO_INPUT_SIZE)
    # TODO(synk): move this gather in-kernel (tables as grid-invariant VMEM inputs)
    # to cut the x_emb HBM round trip once dynamic row-gather lowers reliably.
    emb_list = [jnp.take(embeddings[i].astype(jnp.bfloat16), x[:, i], axis=0)
                for i in range(CRITEO_INPUT_SIZE)]
    x_emb = jnp.concatenate(emb_list, axis=1)              # (B, 272) bf16
    kparams = prepare_kernel_params(linears)
    return criteo_mlp_pallas(x_emb, kparams, tile_b=tile_b)


def criteo_mlp_ref(x, embeddings, linears, *, bf16_dots):
    """Pure-JAX reference (optionally matching the kernel's bf16-MXU / f32-acc path)."""
    x = x.reshape(-1, CRITEO_INPUT_SIZE)
    emb_list = [jnp.take(embeddings[i], x[:, i], axis=0)
                for i in range(CRITEO_INPUT_SIZE)]
    h = jnp.concatenate(emb_list, axis=1).astype(jnp.float32)
    for li, (w, b) in enumerate(linears):
        if bf16_dots:
            h = jnp.dot(h.astype(jnp.bfloat16), w.astype(jnp.bfloat16),
                        preferred_element_type=jnp.float32) + b
        else:
            h = h @ w + b
        if li < len(linears) - 1:
            h = jnp.where(h > 0, h, LEAKY_SLOPE * h)
    return h


if __name__ == "__main__":
    key = jax.random.PRNGKey(0)
    key_params, key_x = jax.random.split(key)

    embeddings, linears = init_params(key_params)

    # Small batch of integer feature indices, each within its table's range.
    # B=40 with tile_b=16 exercises the batch tiling + ragged-last-block path
    # (grid=(3,), last block partially out of bounds and masked on writeback).
    B = 40
    idx_keys = jax.random.split(key_x, CRITEO_INPUT_SIZE)
    cols = [jax.random.randint(idx_keys[i], (B,), 0, EMBEDDING_NUM[i], jnp.int32)
            for i in range(CRITEO_INPUT_SIZE)]
    x = jnp.stack(cols, axis=1)  # (B, 17) int32

    out = jax.block_until_ready(
        criteo_mlp_forward(x, embeddings, linears, tile_b=16))

    ref_bf16 = jax.block_until_ready(
        criteo_mlp_ref(x, embeddings, linears, bf16_dots=True))
    ref_f32 = jax.block_until_ready(
        criteo_mlp_ref(x, embeddings, linears, bf16_dots=False))

    assert out.shape == (B, OUTPUT_SIZE), out.shape
    # Check against the bf16-MXU / f32-accumulate computation (kernel additionally
    # runs the LeakyReLU in bf16, which only perturbs the 0.01-scaled branch).
    assert jnp.allclose(out, ref_bf16, atol=5e-3, rtol=5e-3), (out, ref_bf16)
    # Loose check against the full-f32 reference (bf16 weight quantization only).
    assert jnp.allclose(out, ref_f32, atol=3e-2, rtol=3e-2), (out, ref_f32)

    print("KERNEL_OK")
</pallas_src>

<mosaic_0001>
module attributes {stable_mosaic.version = 11 : i64} {
  func.func @mlp_kernel(%arg0: i32, %arg1: memref<16x272xbf16, #tpu.memory_space<vmem>>, %arg2: memref<272x256xbf16, #tpu.memory_space<vmem>>, %arg3: memref<1x256xf32, #tpu.memory_space<vmem>>, %arg4: memref<256x256xbf16, #tpu.memory_space<vmem>>, %arg5: memref<1x256xf32, #tpu.memory_space<vmem>>, %arg6: memref<256x128xbf16, #tpu.memory_space<vmem>>, %arg7: memref<1x128xf32, #tpu.memory_space<vmem>>, %arg8: memref<128x8xbf16, #tpu.memory_space<vmem>>, %arg9: memref<1x8xf32, #tpu.memory_space<vmem>>, %arg10: memref<16x8xf32, #tpu.memory_space<vmem>>) attributes {dimension_semantics = [#tpu.dimension_semantics<parallel>], iteration_bounds = array<i64: 3>, scalar_prefetch = 0 : i64, scratch_operands = 0 : i64, tpu.core_type = #tpu.core_type<tc>, window_params = [{transform_indices = @transform_0, window_bounds = array<i64: 16, 272>}, {pipeline_mode = #tpu.pipeline_mode<synchronous>, transform_indices = @transform_1, window_bounds = array<i64: 272, 256>}, {pipeline_mode = #tpu.pipeline_mode<synchronous>, transform_indices = @transform_2, window_bounds = array<i64: 1, 256>}, {pipeline_mode = #tpu.pipeline_mode<synchronous>, transform_indices = @transform_3, window_bounds = array<i64: 256, 256>}, {pipeline_mode = #tpu.pipeline_mode<synchronous>, transform_indices = @transform_4, window_bounds = array<i64: 1, 256>}, {pipeline_mode = #tpu.pipeline_mode<synchronous>, transform_indices = @transform_5, window_bounds = array<i64: 256, 128>}, {pipeline_mode = #tpu.pipeline_mode<synchronous>, transform_indices = @transform_6, window_bounds = array<i64: 1, 128>}, {pipeline_mode = #tpu.pipeline_mode<synchronous>, transform_indices = @transform_7, window_bounds = array<i64: 128, 8>}, {pipeline_mode = #tpu.pipeline_mode<synchronous>, transform_indices = @transform_8, window_bounds = array<i64: 1, 8>}, {transform_indices = @transform_9, window_bounds = array<i64: 16, 8>}]} {
    %c0 = arith.constant 0 : index
    %c0_0 = arith.constant 0 : index
    %0 = vector.load %arg1[%c0, %c0_0] : memref<16x272xbf16, #tpu.memory_space<vmem>>, vector<16x272xbf16>
    %c0_1 = arith.constant 0 : index
    %c0_2 = arith.constant 0 : index
    %1 = vector.load %arg2[%c0_1, %c0_2] : memref<272x256xbf16, #tpu.memory_space<vmem>>, vector<272x256xbf16>
    %cst = arith.constant dense<0.000000e+00> : vector<16x256xf32>
    %2 = tpu.matmul %0, %1, %cst {dimension_numbers = #tpu.dot_dimension_numbers<[1], [0], [0], [1], [0, 0, 1, 1], [], []>} : vector<16x272xbf16>, vector<272x256xbf16>, vector<16x256xf32> -> vector<16x256xf32>
    %c0_3 = arith.constant 0 : index
    %c0_4 = arith.constant 0 : index
    %3 = vector.load %arg3[%c0_3, %c0_4] : memref<1x256xf32, #tpu.memory_space<vmem>>, vector<1x256xf32>
    %4 = vector.broadcast %3 : vector<1x256xf32> to vector<16x256xf32>
    %5 = arith.addf %2, %4 : vector<16x256xf32>
    %6 = arith.truncf %5 : vector<16x256xf32> to vector<16x256xbf16>
    %cst_5 = arith.constant 1.000980e-02 : bf16
    %7 = vector.broadcast %cst_5 : bf16 to vector<16x256xbf16>
    %8 = arith.mulf %6, %7 : vector<16x256xbf16>
    %9 = arith.maximumf %6, %8 : vector<16x256xbf16>
    %c0_6 = arith.constant 0 : index
    %c0_7 = arith.constant 0 : index
    %10 = vector.load %arg4[%c0_6, %c0_7] : memref<256x256xbf16, #tpu.memory_space<vmem>>, vector<256x256xbf16>
    %cst_8 = arith.constant dense<0.000000e+00> : vector<16x256xf32>
    %11 = tpu.matmul %9, %10, %cst_8 {dimension_numbers = #tpu.dot_dimension_numbers<[1], [0], [0], [1], [0, 0, 1, 1], [], []>} : vector<16x256xbf16>, vector<256x256xbf16>, vector<16x256xf32> -> vector<16x256xf32>
    %c0_9 = arith.constant 0 : index
    %c0_10 = arith.constant 0 : index
    %12 = vector.load %arg5[%c0_9, %c0_10] : memref<1x256xf32, #tpu.memory_space<vmem>>, vector<1x256xf32>
    %13 = vector.broadcast %12 : vector<1x256xf32> to vector<16x256xf32>
    %14 = arith.addf %11, %13 : vector<16x256xf32>
    %15 = arith.truncf %14 : vector<16x256xf32> to vector<16x256xbf16>
    %cst_11 = arith.constant 1.000980e-02 : bf16
    %16 = vector.broadcast %cst_11 : bf16 to vector<16x256xbf16>
    %17 = arith.mulf %15, %16 : vector<16x256xbf16>
    %18 = arith.maximumf %15, %17 : vector<16x256xbf16>
    %c0_12 = arith.constant 0 : index
    %c0_13 = arith.constant 0 : index
    %19 = vector.load %arg6[%c0_12, %c0_13] : memref<256x128xbf16, #tpu.memory_space<vmem>>, vector<256x128xbf16>
    %cst_14 = arith.constant dense<0.000000e+00> : vector<16x128xf32>
    %20 = tpu.matmul %18, %19, %cst_14 {dimension_numbers = #tpu.dot_dimension_numbers<[1], [0], [0], [1], [0, 0, 1, 1], [], []>} : vector<16x256xbf16>, vector<256x128xbf16>, vector<16x128xf32> -> vector<16x128xf32>
    %c0_15 = arith.constant 0 : index
    %c0_16 = arith.constant 0 : index
    %21 = vector.load %arg7[%c0_15, %c0_16] : memref<1x128xf32, #tpu.memory_space<vmem>>, vector<1x128xf32>
    %22 = vector.broadcast %21 : vector<1x128xf32> to vector<16x128xf32>
    %23 = arith.addf %20, %22 : vector<16x128xf32>
    %24 = arith.truncf %23 : vector<16x128xf32> to vector<16x128xbf16>
    %cst_17 = arith.constant 1.000980e-02 : bf16
    %25 = vector.broadcast %cst_17 : bf16 to vector<16x128xbf16>
    %26 = arith.mulf %24, %25 : vector<16x128xbf16>
    %27 = arith.maximumf %24, %26 : vector<16x128xbf16>
    %c0_18 = arith.constant 0 : index
    %c0_19 = arith.constant 0 : index
    %28 = vector.load %arg8[%c0_18, %c0_19] : memref<128x8xbf16, #tpu.memory_space<vmem>>, vector<128x8xbf16>
    %cst_20 = arith.constant dense<0.000000e+00> : vector<16x8xf32>
    %29 = tpu.matmul %27, %28, %cst_20 {dimension_numbers = #tpu.dot_dimension_numbers<[1], [0], [0], [1], [0, 0, 1, 1], [], []>} : vector<16x128xbf16>, vector<128x8xbf16>, vector<16x8xf32> -> vector<16x8xf32>
    %c0_21 = arith.constant 0 : index
    %c0_22 = arith.constant 0 : index
    %30 = vector.load %arg9[%c0_21, %c0_22] : memref<1x8xf32, #tpu.memory_space<vmem>>, vector<1x8xf32>
    %31 = vector.broadcast %30 : vector<1x8xf32> to vector<16x8xf32>
    %32 = arith.addf %29, %31 : vector<16x8xf32>
    %c0_23 = arith.constant 0 : index
    %c0_24 = arith.constant 0 : index
    %33 = vector.load %arg10[%c0_23, %c0_24] : memref<16x8xf32, #tpu.memory_space<vmem>>, vector<16x8xf32>
    tpu.vector_store %arg10[%c0_23, %c0_24], %32 {strides = array<i32>} : memref<16x8xf32, #tpu.memory_space<vmem>>, vector<16x8xf32>,
    return
  }
  func.func @transform_0(%arg0: i32) -> (i32, i32) {
    %c0_i32 = arith.constant 0 : i32
    %c0_i32_0 = arith.constant 0 : i32
    return %arg0, %c0_i32 : i32, i32
  }
  func.func @transform_1(%arg0: i32) -> (i32, i32) {
    %c0_i32 = arith.constant 0 : i32
    %c0_i32_0 = arith.constant 0 : i32
    %c0_i32_1 = arith.constant 0 : i32
    return %c0_i32, %c0_i32_0 : i32, i32
  }
  func.func @transform_2(%arg0: i32) -> (i32, i32) {
    %c0_i32 = arith.constant 0 : i32
    %c0_i32_0 = arith.constant 0 : i32
    %c0_i32_1 = arith.constant 0 : i32
    return %c0_i32, %c0_i32_0 : i32, i32
  }
  func.func @transform_3(%arg0: i32) -> (i32, i32) {
    %c0_i32 = arith.constant 0 : i32
    %c0_i32_0 = arith.constant 0 : i32
    %c0_i32_1 = arith.constant 0 : i32
    return %c0_i32, %c0_i32_0 : i32, i32
  }
  func.func @transform_4(%arg0: i32) -> (i32, i32) {
    %c0_i32 = arith.constant 0 : i32
    %c0_i32_0 = arith.constant 0 : i32
    %c0_i32_1 = arith.constant 0 : i32
    return %c0_i32, %c0_i32_0 : i32, i32
  }
  func.func @transform_5(%arg0: i32) -> (i32, i32) {
    %c0_i32 = arith.constant 0 : i32
    %c0_i32_0 = arith.constant 0 : i32
    %c0_i32_1 = arith.constant 0 : i32
    return %c0_i32, %c0_i32_0 : i32, i32
  }
  func.func @transform_6(%arg0: i32) -> (i32, i32) {
    %c0_i32 = arith.constant 0 : i32
    %c0_i32_0 = arith.constant 0 : i32
    %c0_i32_1 = arith.constant 0 : i32
    return %c0_i32, %c0_i32_0 : i32, i32
  }
  func.func @transform_7(%arg0: i32) -> (i32, i32) {
    %c0_i32 = arith.constant 0 : i32
    %c0_i32_0 = arith.constant 0 : i32
    %c0_i32_1 = arith.constant 0 : i32
    return %c0_i32, %c0_i32_0 : i32, i32
  }
  func.func @transform_8(%arg0: i32) -> (i32, i32) {
    %c0_i32 = arith.constant 0 : i32
    %c0_i32_0 = arith.constant 0 : i32
    %c0_i32_1 = arith.constant 0 : i32
    return %c0_i32, %c0_i32_0 : i32, i32
  }
  func.func @transform_9(%arg0: i32) -> (i32, i32) {
    %c0_i32 = arith.constant 0 : i32
    %c0_i32_0 = arith.constant 0 : i32
    return %arg0, %c0_i32 : i32, i32
  }
}

</mosaic_0001>

<bundles_post_ra>
// kernel: tpu_custom_call.1
= control target key start
LH: loop header
LB: loop body
LE: loop exit
PB: predicated region body
PF: predicated region fallthrough
CT: control target
= control target key end

     0   :  { %14 = vsyncpa [#allocation3], 0  ;;  %s2454_s0 = inlined_call_operand.vmem [shape: bf16[40,272], index: 0, kind: input, shape index: {}]   ;;  %s2455_s1 = inlined_call_operand.hbm [shape: bf16[272,256], index: 1, kind: input, shape index: {}]   ;;  %s2456_s2 = inlined_call_operand.vmem [shape: f32[1,256], index: 2, kind: input, shape index: {}]   ;;  %s2457_s3 = inlined_call_operand.hbm [shape: bf16[256,256], index: 3, kind: input, shape index: {}]   ;;  %s2458_s4 = inlined_call_operand.vmem [shape: f32[1,256], index: 4, kind: input, shape index: {}]   ;;  %s2459_s5 = inlined_call_operand.hbm [shape: bf16[256,128], index: 5, kind: input, shape index: {}]   ;;  %s2460_s6 = inlined_call_operand.vmem [shape: f32[1,128], index: 6, kind: input, shape index: {}]   ;;  %s2461_s7 = inlined_call_operand.vmem [shape: bf16[128,8], index: 7, kind: input, shape index: {}]   ;;  %s2462_s8 = inlined_call_operand.vmem [shape: f32[1,8], index: 8, kind: input, shape index: {}]   ;;  %s2463_s9 = inlined_call_operand.vmem [shape: f32[40,8], index: 9, kind: output, shape index: {}]  }
   0x1   :  { %15 = vsyncpa [#allocation5], 0  ;;  %s2218_s30 = smov 0   ;;  %s2220_s10 = smov 0  }
   0x2   :  { %s2222_s11 = smov 0  }
   0x3 LB: > { %2467 = sst [smem:[#allocation10_spill]] %s2120_s10  ;;  %s2231_s12 = sadd.s32 4294967295, %s2124_s11   ;;  %s2124_s11 = sphi %s2222_s11, %s2481_s11   ;;  %s2120_s10 = sphi %s2220_s10, %s2480_s10   ;;  %s2116_s30 = sphi %s2218_s30, %s2479_s30  }
   0x4   : > { %s2233_s13 = sadd.s32 1, %s2124_s11   ;;  %s222_s15 = sadd.s32 1, %s2120_s10 }
   0x5   : > { %s219_s14 = ssub.s32 %s2124_s11, %s2233_s13  ;;  %p232_p1 = scmp.ne.s32.totalorder %s2120_s10, %s2116_s30 }
   0x6   : > { %p220_p0 = scmp.eq.s32.totalorder %s219_s14, 0  ;;  %p233_p2 = scmp.eq.s32.totalorder %s2231_s12, 2 }
   0x7   : > { %p1537_p3 = scmp.ge.s32.totalorder %s2124_s11, 1  ;;  %p246_p5 = scmp.lt.s32.totalorder %s2124_s11, 4 }
   0x8   : > { %s2241_s16 = scalar_select %p220_p0, %s2120_s10, %s222_s15  }
   0x9   : > { %p2243_p4 = por %p233_p2, %p232_p1  ;;  %p2464_p6 = scmp.eq.s32.totalorder %s2231_s12, 0 }
   0xa   : > { %2468 = sst [smem:[#allocation11_spill]] %s2241_s16  ;;  %p2248_p7 = pnand %p1537_p3, %p246_p5 }
   0xb   : > { %s2469_s17 = scalar_select %p2243_p4, 1, 0 }
   0xc   : > { %s2470_s18 = scalar_select %p2248_p7, 1, 0 }
   0xd   : > { %p1737_p8 = pneg %p2248_p7  ;;  %s2158_s19 = smov [#allocation4]  }
   0xe   : > { %s274_s20 = sshll.u32 %s2158_s19, 4  ;;  %s2159_s22 = smov [#allocation2]   ;;  %s2254_s20 = int_to_ptr.vmem [resolvable:$true] %s274_s20 }
   0xf   : > { %p2258_p9 = pnand %p2464_p6, %p1737_p8  ;;  %s258_s23 = sshll.u32 %s2159_s22, 4  ;;  %s2262_s23 = int_to_ptr.vmem [resolvable:$true] %s258_s23 }
  0x10   : > { %s2160_s24 = smov [#allocation6]   ;;  %s1978_s28 = scalar_lea.hbm %s2457_s3, 4096 }
  0x11   : > { %s2264_s25 = sshll.u32 %s2160_s24, 4  ;;  %p1979_p10 = scmp.ne.s32.totalorder %s2457_s3, %s1978_s28  ;;  %s291_s25 = int_to_ptr.vmem [resolvable:$true] %s2264_s25 }
  0x12   : > { %p2274_p11 = pneg %p2258_p9  ;;  %p1985_p0 = scmp.lt.u32.totalorder %s1978_s28, %s2457_s3 }
  0x14   : > { %p1981_p12 = pnand %p2274_p11, %p1979_p10 }
  0x16   : > { %p1982_p13 = pneg %p1981_p12 }
  0x18   : > { %p1987_p1 = pnand %p1985_p0, %p1982_p13 }
  0x1a   : > { %1990 = shalt.err (!%p1987_p1)
}
  0x1b   : > { %s1991_s22 = scalar_lea.vmem %s2254_s20, 4096  ;;  %p1999_p8 = scmp.lt.s32.totalorder %s2254_s20, %s2254_s20 }
  0x1c   : > { %p1992_p2 = scmp.ne.s32.totalorder %s2254_s20, %s1991_s22  ;;  %p2000_p6 = scmp.lt.s32.totalorder %s1991_s22, %s1991_s22 }
  0x1e   : > { %p1994_p3 = pnand %p1992_p2, %p2274_p11  ;;  %p2001_p10 = por %p2000_p6, %p1999_p8 }
  0x20   : > { %p1995_p5 = pneg %p1994_p3 }
  0x22   : > { %p2002_p12 = pnand %p2001_p10, %p1995_p5 }
  0x24   : > { %2005 = shalt.err (!%p2002_p12)
}
  0x25   : > { %s2161_s24 = smov 128   ;;  %s2162_s26 = smov 8  }
  0x26   : > { %1743 = dma.hbm_to_vmem [thread:$0]  (!%p2258_p9), %s2457_s3, 4096, %s2254_s20, [#allocation5], %s2161_s24, %s2161_s24, %s2162_s26  }
  0x27   : > { %s2006_s15 = scalar_lea.hbm %s2455_s1, 4352 }
  0x28   : > { %p2007_p6 = scmp.ne.s32.totalorder %s2455_s1, %s2006_s15  ;;  %p2013_p1 = scmp.lt.u32.totalorder %s2006_s15, %s2455_s1 }
  0x2a   : > { %p2009_p13 = pnand %p2007_p6, %p2274_p11 }
  0x2c   : > { %p2010_p0 = pneg %p2009_p13 }
  0x2e   : > { %p2015_p2 = pnand %p2013_p1, %p2010_p0 }
  0x30   : > { %2018 = shalt.err (!%p2015_p2)
}
  0x31   : > { %s2019_s20 = scalar_lea.vmem %s2262_s23, 4352  ;;  %p2027_p10 = scmp.lt.s32.totalorder %s2262_s23, %s2262_s23 }
  0x32   : > { %p2020_p3 = scmp.ne.s32.totalorder %s2262_s23, %s2019_s20  ;;  %p2028_p12 = scmp.lt.s32.totalorder %s2019_s20, %s2019_s20 }
  0x34   : > { %p2022_p5 = pnand %p2020_p3, %p2274_p11  ;;  %p2029_p6 = por %p2028_p12, %p2027_p10 }
  0x36   : > { %p2023_p8 = pneg %p2022_p5 }
  0x38   : > { %p2030_p13 = pnand %p2029_p6, %p2023_p8 }
  0x3a   : > { %2033 = shalt.err (!%p2030_p13)
}
  0x3b   : > { %1740 = dma.hbm_to_vmem [thread:$0]  (!%p2258_p9), %s2455_s1, 4352, %s2262_s23, [#allocation3], %s2161_s24, %s2161_s24, %s2162_s26  }
  0x3c   : > { %s2034_s29 = scalar_lea.hbm %s2459_s5, 2048 }
  0x3d   : > { %p2035_p0 = scmp.ne.s32.totalorder %s2459_s5, %s2034_s29  ;;  %p2041_p3 = scmp.lt.u32.totalorder %s2034_s29, %s2459_s5 }
  0x3f   : > { %p2037_p1 = pnand %p2035_p0, %p2274_p11 }
  0x41   : > { %p2038_p2 = pneg %p2037_p1 }
  0x43   : > { %p2043_p5 = pnand %p2041_p3, %p2038_p2 }
  0x45   : > { %2046 = shalt.err (!%p2043_p5)
}
  0x46   : > { %s2047_s20 = scalar_lea.vmem %s291_s25, 2048  ;;  %p2055_p6 = scmp.lt.s32.totalorder %s291_s25, %s291_s25 }
  0x47   : > { %p2048_p8 = scmp.ne.s32.totalorder %s291_s25, %s2047_s20  ;;  %p2056_p13 = scmp.lt.s32.totalorder %s2047_s20, %s2047_s20 }
  0x49   : > { %p2050_p10 = pnand %p2048_p8, %p2274_p11  ;;  %p2057_p4 = por %p2056_p13, %p2055_p6 }
  0x4b   : > { %p2051_p12 = pneg %p2050_p10 }
  0x4d   : > { %p2058_p7 = pnand %p2057_p4, %p2051_p12 }
  0x4f   : > { %2061 = shalt.err (!%p2058_p7)
}
  0x50   : > { %s2163_s23 = smov 64   ;;  %s2164_s24 = smov 4  }
  0x51   : > { %1746 = dma.hbm_to_vmem [thread:$0]  (!%p2258_p9), %s2459_s5, 2048, %s291_s25, [#allocation5], %s2163_s23, %s2163_s23, %s2164_s24  }
  0x52   : > { %p2473_p0 = scmp.ne.s32.totalorder %s2470_s18, 0 }
  0x53   : > { %p2474_p1 = scmp.eq.s32.totalorder (!%p2473_p0), %s2231_s12, 0 }
  0x54   : > { %335 = sbr.rel (%p2473_p0) target bundleno = 1101 (0x44d), region = 56 }
  0x5b   : > { %2107 = dma.done.wait (%p2474_p1), [#allocation3], 4352   ;;  %p2475_p11 = pmov %p2474_p1 }
  0x5c   : > { %p2476_p4 = pmov %p2474_p1 }
  0x5d   : > { %2109 = vsyncadd (%p2475_p11), [#allocation3], 4294962944 }
  0x5e   : > { %2111 = dma.done.wait (%p2476_p4), [#allocation5], 6144   ;;  %p2477_p7 = pmov %p2474_p1 }
  0x5f   : > { %v2165_v0 = vmov 0   ;;  %v1851_v1 = vld [vmem:[#allocation2 + $0x4] ss:$8 sps:$4 sm:$0xff]   ;;  %v1853_v2 = vld [vmem:[#allocation2] ss:$8 sps:$4 sm:$0xff]   ;;  %s2348_s18 = sshll.u32 %s2231_s12, 1 }
  0x60   : > { %2113 = vsyncadd (%p2477_p7), [#allocation5], 4294961152  ;;  %722 = vmatprep.mubr.bf16.mxu1 %v2165_v0  ;;  %647 = vmatprep.subr.bf16.mxu0 %v1851_v1  ;;  %v1854_v3 = vld [vmem:[#allocation2 + $0x14] ss:$8 sps:$4 sm:$0xff]   ;;  %v1856_v4 = vld [vmem:[#allocation2 + $0x10] ss:$8 sps:$4 sm:$0xff]  }
  0x61   : > { %648 = vmatpush1.bf16.msra.mxu0 %v1853_v2  ;;  %v1857_v5 = vld [vmem:[#allocation2 + $0x24] ss:$8 sps:$4 sm:$0xff]   ;;  %v1859_v6 = vld [vmem:[#allocation2 + $0x20] ss:$8 sps:$4 sm:$0xff]   ;;  %v1860_v7 = vld [vmem:[#allocation2 + $0x34] ss:$8 sps:$4 sm:$0xff]  }
  0x62   : > { %649 = vmatprep.subr.bf16.mxu0 %v1854_v3  ;;  %p390_p9 = scmp.lt.s32.totalorder %s2348_s18, 4  ;;  %v1862_v8 = vld [vmem:[#allocation2 + $0x30] ss:$8 sps:$4 sm:$0xff]   ;;  %v1863_v9 = vld [vmem:[#allocation2 + $0x44] ss:$8 sps:$4 sm:$0xff]   ;;  %vm643_vm0 = vcmask 130048  }
  0x63   : > { %v1865_v10 = vld [vmem:[#allocation2 + $0x40] ss:$8 sps:$4 sm:$0xff]   ;;  %v1866_v11 = vld [vmem:[#allocation2 + $0x54] ss:$8 sps:$4 sm:$0xff]   ;;  %v1868_v12 = vld [vmem:[#allocation2 + $0x50] ss:$8 sps:$4 sm:$0xff]  }
  0x64   : > { %s391_s21 = scalar_select %p390_p9, %s2348_s18, 4  ;;  %v1869_v13 = vld [vmem:[#allocation2 + $0x64] ss:$8 sps:$4 sm:$0xff]   ;;  %v1871_v15 = vld [vmem:[#allocation2 + $0x60] ss:$8 sps:$4 sm:$0xff]   ;;  %vm2167_vm1 = vmmov 0  }
  0x65   : > { %650 = vmatpush1.bf16.msra.mxu0 %v1856_v4  ;;  %v1896_v14 = vld [vmem:[#allocation2 + $0x104] ss:$8 sps:$4 sm:$0xff]   ;;  %v1900_v16 = vld [vmem:[#allocation2 + $0x100] ss:$8 sps:$4 sm:$0xff]   ;;  %v1872_v17 = vld [vmem:[#allocation2 + $0x74] ss:$8 sps:$4 sm:$0xff]  }
  0x66   : > { %651 = vmatprep.subr.bf16.mxu0 %v1857_v5  ;;  %s1724_s25 = smul.u32 12, %s391_s21  ;;  %690 = vmatprep.subr.bf16.mxu1 %v1896_v14  ;;  %v1906_v20 = vld [vmem:[#allocation4] ss:$8 sps:$4 sm:$0xff]   ;;  %v1908_v21 = vld [vmem:[#allocation4 + $0x4] ss:$8 sps:$4 sm:$0xff]   ;;  %s381_s20 = sand.u32 1, %s2116_s30  }
  0x67   : > { %691 = vmatpush1.bf16.msra.mxu1 %v1900_v16  ;;  %v1874_v22 = vld [vmem:[#allocation2 + $0x70] ss:$8 sps:$4 sm:$0xff]   ;;  %v1911_v23 = vld [vmem:[#allocation4 + $0x14] ss:$8 sps:$4 sm:$0xff]   ;;  %v1909_v25 = vld [vmem:[#allocation4 + $0x10] ss:$8 sps:$4 sm:$0xff]  }
  0x68   : > { %s2355_s27 = scalar_lea.vmem %s2454_s0, %s1724_s25  ;;  %v1875_v24 = vld [vmem:[#allocation2 + $0x84] ss:$8 sps:$4 sm:$0xff]   ;;  %943 = vmatprep.subr.bf16.mxu1 %v1908_v21  ;;  %v1914_v26 = vld [vmem:[#allocation4 + $0x24] ss:$8 sps:$4 sm:$0xff]   ;;  %v1877_v27 = vld [vmem:[#allocation2 + $0x80] ss:$8 sps:$4 sm:$0xff]  }
  0x69   : > { %652 = vmatpush1.bf16.msra.mxu0 %v1859_v6  ;;  %v1904_v18 = vld [vmem:[%s2355_s27 + $0x4] ss:$12 sps:$4 sm:$0xff]   ;;  %v1905_v19 = vld [vmem:[%s2355_s27 + $0x8] ss:$12 sps:$4 sm:$0xff]   ;;  %v1902_v57 = vld [vmem:[%s2355_s27] ss:$12 sps:$4 sm:$0xff]  }
  0x6a   : > { %653 = vmatprep.subr.bf16.mxu0 %v1860_v7  ;;  %679 = vmatprep.mubr.bf16.mxu0 %v1904_v18  ;;  %v1878_v28 = vld [vmem:[#allocation2 + $0x94] ss:$8 sps:$4 sm:$0xff]   ;;  %v1912_v29 = vld [vmem:[#allocation4 + $0x20] ss:$8 sps:$4 sm:$0xff]   ;;  %v1917_v30 = vld [vmem:[#allocation4 + $0x34] ss:$8 sps:$4 sm:$0xff]  }
  0x6b   : > { %1586 = vmatmul.mubr.msk.bf16.vlgmr.msra.gmra.mrb[0].mxu1 %vm643_vm0, %v1905_v19  ;;  %v1880_v31 = vld [vmem:[#allocation2 + $0x90] ss:$8 sps:$4 sm:$0xff]   ;;  %v1881_v32 = vld [vmem:[#allocation2 + $0xa4] ss:$8 sps:$4 sm:$0xff]   ;;  %v1915_v33 = vld [vmem:[#allocation4 + $0x30] ss:$8 sps:$4 sm:$0xff]  }
  0x6c   : > { %944 = vmatpush1.bf16.msra.mxu1 %v1906_v20  ;;  %v1920_v34 = vld [vmem:[#allocation4 + $0x44] ss:$8 sps:$4 sm:$0xff]   ;;  %v1883_v35 = vld [vmem:[#allocation2 + $0xa0] ss:$8 sps:$4 sm:$0xff]   ;;  %v1918_v37 = vld [vmem:[#allocation4 + $0x40] ss:$8 sps:$4 sm:$0xff]  }
  0x6d   : > { %654 = vmatpush1.bf16.msra.mxu0 %v1862_v8  ;;  %945 = vmatprep.subr.bf16.mxu1 %v1911_v23  ;;  %v1884_v36 = vld [vmem:[#allocation2 + $0xb4] ss:$8 sps:$4 sm:$0xff]   ;;  %v1923_v38 = vld [vmem:[#allocation4 + $0x54] ss:$8 sps:$4 sm:$0xff]   ;;  %v1886_v39 = vld [vmem:[#allocation2 + $0xb0] ss:$8 sps:$4 sm:$0xff]  }
  0x6e   : > { %655 = vmatprep.subr.bf16.mxu0 %v1863_v9  ;;  %v1887_v40 = vld [vmem:[#allocation2 + $0xc4] ss:$8 sps:$4 sm:$0xff]   ;;  %v1921_v41 = vld [vmem:[#allocation4 + $0x50] ss:$8 sps:$4 sm:$0xff]   ;;  %v1926_v42 = vld [vmem:[#allocation4 + $0x64] ss:$8 sps:$4 sm:$0xff]  }
  0x6f   : > { %v1889_v43 = vld [vmem:[#allocation2 + $0xc0] ss:$8 sps:$4 sm:$0xff]   ;;  %v1890_v44 = vld [vmem:[#allocation2 + $0xd4] ss:$8 sps:$4 sm:$0xff]   ;;  %v1924_v45 = vld [vmem:[#allocation4 + $0x60] ss:$8 sps:$4 sm:$0xff]  }
  0x70   : > { %946 = vmatpush1.bf16.msra.mxu1 %v1909_v25  ;;  %v1929_v46 = vld [vmem:[#allocation4 + $0x74] ss:$8 sps:$4 sm:$0xff]   ;;  %v1892_v47 = vld [vmem:[#allocation2 + $0xd0] ss:$8 sps:$4 sm:$0xff]   ;;  %v1927_v49 = vld [vmem:[#allocation4 + $0x70] ss:$8 sps:$4 sm:$0xff]  }
  0x71   : > { %656 = vmatpush1.bf16.msra.mxu0 %v1865_v10  ;;  %947 = vmatprep.subr.bf16.mxu1 %v1914_v26  ;;  %v1893_v48 = vld [vmem:[#allocation2 + $0xe4] ss:$8 sps:$4 sm:$0xff]   ;;  %v1932_v50 = vld [vmem:[#allocation4 + $0x84] ss:$8 sps:$4 sm:$0xff]   ;;  %v1895_v51 = vld [vmem:[#allocation2 + $0xe0] ss:$8 sps:$4 sm:$0xff]  }
  0x72   : > { %657 = vmatprep.subr.bf16.mxu0 %v1866_v11  ;;  %v1898_v52 = vld [vmem:[#allocation2 + $0xf4] ss:$8 sps:$4 sm:$0xff]   ;;  %v1930_v53 = vld [vmem:[#allocation4 + $0x80] ss:$8 sps:$4 sm:$0xff]   ;;  %v1935_v54 = vld [vmem:[#allocation4 + $0x94] ss:$8 sps:$4 sm:$0xff]   ;;  %v448_v11 = vlaneseq }
  0x73   : > { %v1901_v55 = vld [vmem:[#allocation2 + $0xf0] ss:$8 sps:$4 sm:$0xff]   ;;  %v1933_v56 = vld [vmem:[#allocation4 + $0x90] ss:$8 sps:$4 sm:$0xff]   ;;  %v1938_v58 = vld [vmem:[#allocation4 + $0xa4] ss:$8 sps:$4 sm:$0xff]  }
  0x74   : > { %948 = vmatpush1.bf16.msra.mxu1 %v1912_v29  ;;  %v1936_v59 = vld [vmem:[#allocation4 + $0xa0] ss:$8 sps:$4 sm:$0xff]   ;;  %v1941_v60 = vld [vmem:[#allocation4 + $0xb4] ss:$8 sps:$4 sm:$0xff]   ;;  %v1939_v61 = vld [vmem:[#allocation4 + $0xb0] ss:$8 sps:$4 sm:$0xff]  }
  0x75   : > { %658 = vmatpush1.bf16.msra.mxu0 %v1868_v12  ;;  %949 = vmatprep.subr.bf16.mxu1 %v1917_v30  ;;  %v1942_v62 = vld [vmem:[#allocation4 + $0xc0] ss:$8 sps:$4 sm:$0xff]   ;;  %v1944_v63 = vld [vmem:[#allocation4 + $0xc4] ss:$8 sps:$4 sm:$0xff]   ;;  %v1947_v0 = vld [vmem:[#allocation4 + $0xd4] ss:$8 sps:$4 sm:$0xff]  }
  0x76   : > { %659 = vmatprep.subr.bf16.mxu0 %v1869_v13  ;;  %v1945_v1 = vld [vmem:[#allocation4 + $0xd0] ss:$8 sps:$4 sm:$0xff]   ;;  %v1950_v2 = vld [vmem:[#allocation4 + $0xe4] ss:$8 sps:$4 sm:$0xff]   ;;  %v1948_v3 = vld [vmem:[#allocation4 + $0xe0] ss:$8 sps:$4 sm:$0xff]  }
  0x77   : > { %v1953_v4 = vld [vmem:[#allocation4 + $0xf4] ss:$8 sps:$4 sm:$0xff]   ;;  %v1951_v5 = vld [vmem:[#allocation4 + $0xf0] ss:$8 sps:$4 sm:$0xff]   ;;  %v1954_v6 = vld [vmem:[#allocation6 + $0x40] sm:$0xff]   ;;  %v2360_v12 = vshrl.u32 %v448_v11, 7 }
  0x78   : > { %950 = vmatpush1.bf16.msra.mxu1 %v1915_v33  ;;  %v446_v14 = vld [vmem:[%s2456_s2] sm:$0x3]  ;;  %v1976_v11 = vld [vmem:[%s2461_s7 + $0x30] sm:$0xff]   ;;  %s1546_s23 = sshll.u32 %s381_s20, 4  ;;  %vm1283_vm2 = vcmask 64512   ;;  %p2478_p2 = scmp.ne.s32.totalorder %s2469_s17, 0 }
  0x79   : > { %660 = vmatpush1.bf16.msra.mxu0 %v1871_v15  ;;  %951 = vmatprep.subr.bf16.mxu1 %v1920_v34  ;;  %v450_v13 = vsub.s32 0, %v2360_v12  ;;  %v454_v15 = vsub.s32 1, %v2360_v12  ;;  %v1977_v12 = vld [vmem:[%s2461_s7 + $0x38] sm:$0xff]   ;;  %s2409_s10 = scalar_lea.vmem [#allocation7], %s1546_s23   ;;  %s1294_s30 = ssub.s32 (%p2478_p2), 5, %s2348_s18 }
  0x7a   : > { %661 = vmatprep.subr.bf16.mxu0 %v1872_v17  ;;  %s1662_s21 = sshll.u32 (%p2478_p2), %s2231_s12, 4  ;;  %p1295_p3 = scmp.lt.s32.totalorder (%p2478_p2), %s1294_s30, 2 }
  0x7b   : > { %v451_v16 = vrot.slane %v446_v14, %v450_v13  ;;  %v455_v17 = vrot.slane %v446_v14, %v454_v15  ;;  %s2420_s16 = scalar_lea.vmem (%p2478_p2), %s2463_s9, %s1662_s21  }
  0x7c   : > { %952 = vmatpush1.bf16.msra.mxu1 %v1918_v37  ;;  %v1956_v37 = vld [vmem:[#allocation6 + $0x48] sm:$0xff]  }
  0x7d   : > { %662 = vmatpush1.bf16.msra.mxu0 %v1874_v22  ;;  %953 = vmatprep.subr.bf16.mxu1 %v1923_v38  ;;  %v1957_v38 = vld [vmem:[#allocation6 + $0x8] sm:$0xff]  }
  0x7e   : > { %663 = vmatprep.subr.bf16.mxu0 %v1875_v24 }
  0x80   : > { %954 = vmatpush1.bf16.msra.mxu1 %v1921_v41  ;;  %v1960_v41 = vld [vmem:[#allocation6 + $0x58] sm:$0xff]  }
  0x81   : > { %664 = vmatpush1.bf16.msra.mxu0 %v1877_v27  ;;  %955 = vmatprep.subr.bf16.mxu1 %v1926_v42  ;;  %v1961_v42 = vld [vmem:[#allocation6 + $0x18] sm:$0xff]  }
  0x82   : > { %665 = vmatprep.subr.bf16.mxu0 %v1878_v28 }
  0x84   : > { %956 = vmatpush1.bf16.msra.mxu1 %v1924_v45  ;;  %v1964_v45 = vld [vmem:[#allocation6 + $0x68] sm:$0xff]  }
  0x85   : > { %666 = vmatpush1.bf16.msra.mxu0 %v1880_v31  ;;  %957 = vmatprep.subr.bf16.mxu1 %v1929_v46  ;;  %v1965_v46 = vld [vmem:[#allocation6 + $0x28] sm:$0xff]  }
  0x86   : > { %667 = vmatprep.subr.bf16.mxu0 %v1881_v32 }
  0x88   : > { %958 = vmatpush1.bf16.msra.mxu1 %v1927_v49  ;;  %v1968_v49 = vld [vmem:[#allocation6 + $0x78] sm:$0xff]  }
  0x89   : > { %668 = vmatpush1.bf16.msra.mxu0 %v1883_v35  ;;  %959 = vmatprep.subr.bf16.mxu1 %v1932_v50  ;;  %v1955_v35 = vld [vmem:[#allocation6] sm:$0xff]   ;;  %v1969_v50 = vld [vmem:[#allocation6 + $0x38] sm:$0xff]  }
  0x8a   : > { %669 = vmatprep.subr.bf16.mxu0 %v1884_v36 }
  0x8c   : > { %960 = vmatpush1.bf16.msra.mxu1 %v1930_v53  ;;  %v1971_v53 = vld [vmem:[%s2461_s7 + $0x8] sm:$0xff]  }
  0x8d   : > { %670 = vmatpush1.bf16.msra.mxu0 %v1886_v39  ;;  %961 = vmatprep.subr.bf16.mxu1 %v1935_v54  ;;  %v1958_v39 = vld [vmem:[#allocation6 + $0x50] sm:$0xff]   ;;  %v1972_v54 = vld [vmem:[%s2461_s7 + $0x10] sm:$0xff]  }
  0x8e   : > { %671 = vmatprep.subr.bf16.mxu0 %v1887_v40  ;;  %v1959_v40 = vld [vmem:[#allocation6 + $0x10] sm:$0xff]  }
  0x90   : > { %962 = vmatpush1.bf16.msra.mxu1 %v1933_v56  ;;  %v1974_v56 = vld [vmem:[%s2461_s7 + $0x20] sm:$0xff]  }
  0x91   : > { %672 = vmatpush1.bf16.msra.mxu0 %v1889_v43  ;;  %963 = vmatprep.subr.bf16.mxu1 %v1938_v58  ;;  %v1962_v43 = vld [vmem:[#allocation6 + $0x60] sm:$0xff]  }
  0x92   : > { %673 = vmatprep.subr.bf16.mxu0 %v1890_v44  ;;  %v1963_v44 = vld [vmem:[#allocation6 + $0x20] sm:$0xff]  }
  0x94   : > { %964 = vmatpush1.bf16.msra.mxu1 %v1936_v59 }
  0x95   : > { %674 = vmatpush1.bf16.msra.mxu0 %v1892_v47  ;;  %965 = vmatprep.subr.bf16.mxu1 %v1941_v60  ;;  %v1966_v47 = vld [vmem:[#allocation6 + $0x70] sm:$0xff]  }
  0x96   : > { %675 = vmatprep.subr.bf16.mxu0 %v1893_v48  ;;  %v1967_v48 = vld [vmem:[#allocation6 + $0x30] sm:$0xff]  }
  0x98   : > { %966 = vmatpush1.bf16.msra.mxu1 %v1939_v61 }
  0x99   : > { %676 = vmatpush1.bf16.msra.mxu0 %v1895_v51  ;;  %967 = vmatprep.subr.bf16.mxu1 %v1944_v63  ;;  %v1970_v51 = vld [vmem:[%s2461_s7] sm:$0xff]  }
  0x9a   : > { %677 = vmatprep.subr.bf16.mxu0 %v1898_v52  ;;  %v2166_v52 = vmov 0.0  }
  0x9c   : > { %968 = vmatpush1.bf16.msra.mxu1 %v1942_v62 }
  0x9d   : > { %678 = vmatpush1.bf16.msra.mxu0 %v1901_v55  ;;  %969 = vmatprep.subr.bf16.mxu1 %v1947_v0  ;;  %v1973_v55 = vld [vmem:[%s2461_s7 + $0x18] sm:$0xff]  }
  0x9e   : > { %1696 = vmatprep.subr.bf16.mxu0 %v2166_v52 }
  0xa0   : > { %680 = vmatmul.mubr.bf16.vlgmr.msra.gmra.mrb[0].mxu0 %v1902_v57  ;;  %970 = vmatpush1.bf16.msra.mxu1 %v1945_v1  ;;  %v771_v57 = vld [vmem:[%s2458_s4] sm:$0x3] }
  0xa1   : > { %971 = vmatprep.subr.bf16.mxu1 %v1950_v2  ;;  %1697 = vmatpush3.bf16.msra.mxu0 %v1970_v51  ;;  %v776_v58 = vrot.slane %v771_v57, %v450_v13  ;;  %v780_v60 = vrot.slane %v771_v57, %v454_v15 }
  0xa2   : > { %1698 = vmatprep.subr.bf16.mxu0 %v2166_v52  ;;  %1712 = vmatprep.mubr.msk.bf16.mxu0 %vm2167_vm1, %v2166_v52 }
  0xa4   : > { %972 = vmatpush1.bf16.msra.mxu1 %v1948_v3 }
  0xa5   : > { %973 = vmatprep.subr.bf16.mxu1 %v1953_v4  ;;  %1699 = vmatpush3.bf16.msra.mxu0 %v1971_v53 }
  0xa6   : > { %1700 = vmatprep.subr.bf16.mxu0 %v2166_v52 }
  0xa8   : > { %974 = vmatpush1.bf16.msra.mxu1 %v1951_v5 }
  0xa9   : > { %1665 = vmatprep.subr.bf16.mxu1 %v1954_v6  ;;  %1701 = vmatpush3.bf16.msra.mxu0 %v1972_v54 }
  0xaa   : > { %1702 = vmatprep.subr.bf16.mxu0 %v2166_v52 }
  0xad   : > { %1703 = vmatpush3.bf16.msra.mxu0 %v1973_v55 }
  0xae   : > { %1704 = vmatprep.subr.bf16.mxu0 %v2166_v52 }
  0xb1   : > { %1705 = vmatpush3.bf16.msra.mxu0 %v1974_v56 }
  0xb2   : > { %1706 = vmatprep.subr.bf16.mxu0 %v2166_v52 }
 0x13e   : > { %v724_v7 = vpop.f32.mrb[0].mxu1 }
 0x13f   : > { %v726_v8 = vpop.f32.mrb[1].mxu1 }
 0x140   : > { %v728_v9 = vpop.f32.mrb[2].mxu1 }
 0x141   : > { %v730_v10 = vpop.f32.mrb[3].mxu1 }
 0x173   : > { %v681_v18 = vpop.f32.mrb[0].mxu0 }
 0x174   : > { %v682_v19 = vadd.f32 %v681_v18, %v451_v16  ;;  %v683_v20 = vpop.f32.mrb[1].mxu0 }
 0x175   : > { %v684_v21 = vadd.f32 %v683_v20, %v455_v17  ;;  %v685_v22 = vpop.f32.mrb[2].mxu0 }
 0x176   : > { %v725_v23 = vadd.f32 %v724_v7, %v682_v19  ;;  %v686_v24 = vadd.f32 %v685_v22, %v451_v16  ;;  %v687_v25 = vpop.f32.mrb[3].mxu0 }
 0x177   : > { %v727_v26 = vadd.f32 %v726_v8, %v684_v21  ;;  %v688_v27 = vadd.f32 %v687_v25, %v455_v17  ;;  %v1619_v17 = vld [vmem:[%s2460_s6] ss:$0 sm:$0xff] }
 0x178   : > { %v729_v28 = vadd.f32 %v728_v9, %v686_v24  ;;  %v1636_v25 = vld [vmem:[%s2462_s8] ss:$0 sm:$0xff] }
 0x179   : > { %v731_v29 = vadd.f32 %v730_v10, %v688_v27  ;;  %v1975_v10 = vld [vmem:[%s2461_s7 + $0x28] sm:$0xff]  }
 0x17a   : > { %v733_v30 = vpack.c.bf16 %v729_v28, %v725_v23  ;;  %1707 = vmatpush3.bf16.msra.mxu0 %v1975_v10 }
 0x17b   : > { %v734_v31 = vpack.c.bf16 %v731_v29, %v727_v26  ;;  %1708 = vmatprep.subr.bf16.mxu0 %v2166_v52 }
 0x17c   : > { %v735_v32 = vmul.bf16 1009007652, %v733_v30 }
 0x17d   : > { %v736_v33 = vmul.bf16 1009007652, %v734_v31 }
 0x17e   : > { %v737_v36 = vmax.bf16 %v735_v32, %v733_v30  ;;  %1709 = vmatpush3.bf16.msra.mxu0 %v1976_v11 }
 0x17f   : > { %v738_v34 = vmax.bf16 %v736_v33, %v734_v31  ;;  %1710 = vmatprep.subr.bf16.mxu0 %v2166_v52 }
 0x181   : > { %975 = vmatprep.mubr.bf16.mxu1 %v738_v34 }
 0x182   : > { %976 = vmatmul.mubr.bf16.vlgmr.msra.gmra.mrb[4].mxu1 %v737_v36  ;;  %1711 = vmatpush3.bf16.msra.mxu0 %v1977_v12 }
 0x183   : > { %1666 = vmatpush3.bf16.msra.mxu1 %v1955_v35 }
 0x184   : > { %1667 = vmatprep.subr.bf16.mxu1 %v1956_v37 }
 0x187   : > { %1668 = vmatpush3.bf16.msra.mxu1 %v1957_v38 }
 0x188   : > { %1669 = vmatprep.subr.bf16.mxu1 %v1958_v39 }
 0x18b   : > { %1670 = vmatpush3.bf16.msra.mxu1 %v1959_v40 }
 0x18c   : > { %1671 = vmatprep.subr.bf16.mxu1 %v1960_v41 }
 0x18f   : > { %1672 = vmatpush3.bf16.msra.mxu1 %v1961_v42 }
 0x190   : > { %1673 = vmatprep.subr.bf16.mxu1 %v1962_v43 }
 0x193   : > { %1674 = vmatpush3.bf16.msra.mxu1 %v1963_v44 }
 0x194   : > { %1675 = vmatprep.subr.bf16.mxu1 %v1964_v45 }
 0x197   : > { %1676 = vmatpush3.bf16.msra.mxu1 %v1965_v46 }
 0x198   : > { %1677 = vmatprep.subr.bf16.mxu1 %v1966_v47 }
 0x19b   : > { %1678 = vmatpush3.bf16.msra.mxu1 %v1967_v48 }
 0x19c   : > { %1679 = vmatprep.subr.bf16.mxu1 %v1968_v49 }
 0x19f   : > { %1680 = vmatpush3.bf16.msra.mxu1 %v1969_v50 }
 0x255   : > { %v977_v59 = vpop.f32.mrb[4].mxu1 }
 0x256   : > { %v979_v61 = vpop.f32.mrb[5].mxu1  ;;  %v978_v63 = vadd.f32 %v977_v59, %v776_v58 }
 0x257   : > { %v981_v62 = vpop.f32.mrb[6].mxu1  ;;  %v980_v2 = vadd.f32 %v979_v61, %v780_v60 }
 0x258   : > { %v982_v0 = vadd.f32 %v981_v62, %v776_v58  ;;  %v983_v1 = vpop.f32.mrb[7].mxu1 }
 0x259   : > { %v984_v3 = vadd.f32 %v983_v1, %v780_v60 }
 0x25a   : > { %v986_v4 = vpack.c.bf16 %v982_v0, %v978_v63 }
 0x25b   : > { %v987_v5 = vpack.c.bf16 %v984_v3, %v980_v2 }
 0x25c   : > { %v988_v6 = vmul.bf16 1009007652, %v986_v4 }
 0x25d   : > { %v989_v7 = vmul.bf16 1009007652, %v987_v5 }
 0x25e   : > { %v990_v9 = vmax.bf16 %v988_v6, %v986_v4 }
 0x25f   : > { %v991_v8 = vmax.bf16 %v989_v7, %v987_v5 }
 0x261   : > { %1159 = vmatprep.mubr.bf16.mxu1 %v991_v8 }
 0x262   : > { %1160 = vmatmul.mubr.bf16.vlgmr.msra.gmra.mrb[8].mxu1 %v990_v9 }
 0x335   : > { %v1681_v13 = vpop.f32.mrb[8].mxu1 }
 0x336   : > { %v1682_v14 = vpop.f32.mrb[9].mxu1 }
 0x337   : > { %v1683_v15 = vadd.f32 %v1682_v14, %v1681_v13  ;;  %v1684_v16 = vpop.f32.mrb[10].mxu1 }
 0x338   : > { %v1685_v18 = vpop.f32.mrb[11].mxu1 }
 0x339   : > { %v1686_v19 = vadd.f32 %v1685_v18, %v1684_v16  ;;  %v1162_v20 = vadd.f32 %v1683_v15, %v1619_v17 }
 0x33b   : > { %v1165_v21 = vadd.f32 %v1686_v19, %v1619_v17 }
 0x33d   : > { %v1168_v22 = vpack.c.bf16 %v1165_v21, %v1162_v20 }
 0x33f   : > { %v1169_v23 = vmul.bf16 1009007652, %v1168_v22 }
 0x341   : > { %v1170_v24 = vmax.bf16 %v1169_v23, %v1168_v22 }
 0x343   : > { %1713 = vmatmul.mubr.bf16.vlgmr.msra.gmra.mrb[4].mxu0 %v1170_v24 }
 0x415   : > { %1292 = sbr.rel (!%p2478_p2) target bundleno = 1101 (0x44d), region = 72 }
 0x416   : > { %v1276_v26 = vpop.f32.mrb[4].mxu0 }
 0x417   : > { %v1277_v27 = vadd.f32 %v1636_v25, %v1276_v26  ;;  %v1714_v28 = vpop.f32.mrb[5].mxu0 }
 0x418   : > { %v1279_v29 = vpop.f32.mrb[6].mxu0 }
 0x419   : > { %1284 = vst.msk [vmem:[%s2409_s10] sm:$0xff] %vm1283_vm2, %v1277_v27  ;;  %v1280_v30 = vadd.f32 %v1636_v25, %v1279_v29  ;;  %v1715_v31 = vpop.f32.mrb[7].mxu0 }
 0x41b   : > { %1285 = vst.msk [vmem:[%s2409_s10 + $0x8] sm:$0xff] %vm1283_vm2, %v1280_v30 }
 0x41c   : > { %s2483_s30 = smov (!%p1295_p3, %s1294_s30), 2 }
 0x41d   : > { %s1647_s27 = sshll.u32 %s2483_s30, 7 }
 0x41e   : > { %p1650_p5 = scmp.eq.s32.totalorder %s1647_s27, 0 }
 0x41f   : > { %s2426_s28 = sshrl.u32 (!%p1650_p5), %s2483_s30, 1 }
 0x420   : > { %1303 = sbr.rel (%p1650_p5) target bundleno = 1101 (0x44d), region = 76  ;;  %p1651_p8 = scmp.le.s32.totalorder (!%p1650_p5), %s2426_s28, 0 }
 0x427   : > { %1465 = sbr.rel (%p1651_p8) target bundleno = 1080 (0x438), region = 153  ;;  %s2126_s12 = smov (!%p1651_p8), %s2420_s16  }
 0x428   : > { %s2130_s17 = smov (!%p1651_p8), %s2409_s10   ;;  %s2134_s18 = smov (!%p1651_p8), 0  }
 0x429   : > { %s2138_s29 = smov (!%p1651_p8), 0  }
 0x42e LB: >> { %v1367_v32 = vld [vmem:[%s2132_s17] sm:$0xff]  ;;  %v1369_v33 = vld [vmem:[%s2132_s17 + $0x8] sm:$0xff]  ;;  %s1371_s11 = sadd.s32 1, %s2136_s18  ;;  %s1361_s29 = sadd.s32 1, %s2140_s29   ;;  %s2140_s29 = sphi %s2138_s29, %s1361_s29   ;;  %s2136_s18 = sphi %s2134_s18, %s2135_s18   ;;  %s2132_s17 = sphi %s2130_s17, %s1376_s17   ;;  %s2128_s12 = sphi %s2126_s12, %s1377_s12  }
 0x42f   : >> { %1368 = vst [vmem:[%s2128_s12] sm:$0xff] %v1367_v32  ;;  %1370 = vst [vmem:[%s2128_s12 + $0x8] sm:$0xff] %v1369_v33  ;;  %p1372_p10 = scmp.ge.s32.totalorder %s1371_s11, %s2426_s28  ;;  %p1360_p12 = scmp.ge.s32.totalorder %s1361_s29, %s2426_s28 }
 0x431   : >> { %s2485_s11 = smov (%p1372_p10, %s1371_s11), 0  ;;  %1363 = sbr.rel (!%p1360_p12) target bundleno = 1070 (0x42e), region = 159 }
 0x432   : >> { %s1652_s15 = sshll.u32 %s2485_s11, 4  ;;  %s2135_s18 = smov %s2485_s11  }
 0x433   : >> { %s1376_s17 = scalar_lea.vmem %s2409_s10, %s1652_s15 [#allocation7]   ;;  %s1377_s12 = scalar_lea.vmem %s2420_s16, %s1652_s15  }
 0x438 PF: > { %s2436_s19 = sand.u32 1, %s2483_s30   ;;  %s1663_s22 = sshll.u32 %s2426_s28, 4 }
 0x439   : > { %s1382_s20 = scalar_lea.vmem %s2409_s10, %s1663_s22 [#allocation7]   ;;  %s1384_s23 = scalar_lea.vmem %s2420_s16, %s1663_s22  }
 0x43a   : > { %p1657_p6 = scmp.le.s32.totalorder %s2436_s19, 0 }
 0x43b   : > { %s2142_s24 = smov (!%p1657_p6), %s1384_s23   ;;  %s2146_s26 = smov (!%p1657_p6), %s1382_s20  }
 0x43c   : > { %1479 = sbr.rel (%p1657_p6) target bundleno = 1101 (0x44d), region = 164  ;;  %s2150_s21 = smov (!%p1657_p6), 0  }
 0x43d   : > { %s2154_s25 = smov (!%p1657_p6), 0  }
 0x443 LB: >> { %v1394_v34 = vld [vmem:[%s2148_s26] sm:$0xff]  ;;  %s1396_s30 = sadd.s32 1, %s2152_s21  ;;  %s1388_s25 = sadd.s32 1, %s2156_s25   ;;  %s2156_s25 = sphi %s2154_s25, %s1388_s25   ;;  %s2152_s21 = sphi %s2150_s21, %s2151_s21   ;;  %s2148_s26 = sphi %s2146_s26, %s1401_s26   ;;  %s2144_s24 = sphi %s2142_s24, %s1402_s24  }
 0x444   : >> { %1395 = vst [vmem:[%s2144_s24] sm:$0xff] %v1394_v34  ;;  %p1397_p13 = scmp.ge.s32.totalorder %s1396_s30, %s2436_s19  ;;  %p1387_p0 = scmp.ge.s32.totalorder %s1388_s25, %s2436_s19 }
 0x446   : >> { %s2487_s30 = smov (%p1397_p13, %s1396_s30), 0  ;;  %1390 = sbr.rel (!%p1387_p0) target bundleno = 1091 (0x443), region = 170 }
 0x447   : >> { %s1658_s10 = sshll.u32 %s2487_s30, 3  ;;  %s2151_s21 = smov %s2487_s30  }
 0x448   : >> { %s1401_s26 = scalar_lea.vmem %s1382_s20, %s1658_s10 [#allocation7]   ;;  %s1402_s24 = scalar_lea.vmem %s1384_s23, %s1658_s10  }
 0x44d PF: > { %s2479_s30 = sld [smem:[#allocation10_spill]]  ;;  %s2480_s10 = sld [smem:[#allocation11_spill]] }
 0x44e   : > { %p18_p1 = scmp.ge.s32.totalorder %s2233_s13, 5   ;;  %s2481_s11 = smov %s2233_s13 }
 0x450   :  { %20 = sbr.rel (!%p18_p1) target bundleno = 3 (0x3), region = 181 }
 0x457   :  { %1418 = vsyncpa [#allocation3], 1 }
 0x458   :  { %1420 = vsyncpa [#allocation3 + $0x1], 1 }
 0x459   :  { %1421 = vsyncpa [#allocation5], 1 }

</bundles_post_ra>
